<compile_context>
chip_gen: v5e
topology: v5e:2x2
jax: 0.10.0
libtpu: 0.0.40
codegen_flags: <defaults>
</compile_context>

<pallas_src>
import functools

import jax
import jax.numpy as jnp
from jax import lax
from jax.experimental import pallas as pl
from jax.experimental.pallas import tpu as pltpu

_BIG = 1e30
_VMEM_TARGET = 40 * 1024 * 1024     # keep the working set well inside v7x's 64 MiB VMEM


def _round_up(x, m):
    return (x + m - 1) // m * m


def _footprint_bytes(tm, tn, d_pad, itemsize):
    """Rough per-step VMEM working set for the chosen tiles."""
    acc_w = 128 if tn % 128 == 0 else tn
    feat = 2 * (tm + tn) * d_pad * itemsize        # double-buffered feature tiles
    vecs = 2 * 2 * (tm + tn) * 4                   # norm + label row/col vector tiles
    scratch = 2 * tm * acc_w * 4                   # hardest-pos / hardest-neg accumulators
    temps = 6 * tm * tn * 4                        # gram/shifted/masked live f32 tiles
    return feat + vecs + scratch + temps


def _choose_tiles(n, d_pad, itemsize):
    """Returns (n_pad, row_tile, col_tile); both tiles divide n_pad."""
    if n <= 128:
        n_pad = _round_up(n, 8)
        return n_pad, n_pad, n_pad                 # single block per direction
    if n <= 512:
        # At least two row blocks so a multi-TensorCore chip (v7x) can shard the
        # "parallel" row axis; padding to a multiple of 16 keeps tm a multiple of 8.
        n_pad = _round_up(n, 16)
        tm, tn = n_pad // 2, n_pad
        if _footprint_bytes(tm, tn, d_pad, itemsize) <= _VMEM_TARGET:
            return n_pad, tm, tn
    # Larger N: MXU-friendly tiles. tn=256 limits padding waste for unlucky N; tm grows
    # with N to cut re-streaming of the column features (col HBM reads ~ n_pad^2*d/tm).
    tn = 256
    tm = 512 if n >= 4096 else 256
    while tm > 128 and _footprint_bytes(tm, tn, d_pad, itemsize) > _VMEM_TARGET:
        tm //= 2
    while tn > 128 and _footprint_bytes(tm, tn, d_pad, itemsize) > _VMEM_TARGET:
        tn //= 2
    n_pad = _round_up(n, max(tm, tn))
    return n_pad, tm, tn


def _triplet_kernel(xr_ref, xc_ref, sqc_ref, sqr_ref, tr_ref, tc_ref,
                    out_ref, max_ref, min_ref, *, margin):
    j = pl.program_id(1)

    @pl.when(j == 0)
    def _init():
        max_ref[...] = jnp.full(max_ref.shape, -_BIG, dtype=max_ref.dtype)
        min_ref[...] = jnp.full(min_ref.shape, _BIG, dtype=min_ref.dtype)

    # Gram tile in NT form: contract the feature axis of both operands, so no transpose
    # of the (tn, d_pad) column tile is materialized (sanity-checkable with
    # pl.lower_as_mlir: no vxpose should appear). Row features are pre-scaled by -2 in
    # the wrapper, hence gram == -2 * x_i . x_j, accumulated in f32 on the MXU.
    gram = lax.dot_general(
        xr_ref[...], xc_ref[...],
        dimension_numbers=(((1,), (1,)), ((), ())),
        preferred_element_type=jnp.float32)                        # (tm, tn) f32

    # Mining statistic: d_ij^2 - ||x_i||^2 (per-row constant dropped; monotone).
    shifted = sqc_ref[...] + gram                                   # single add / elem
    same = tr_ref[...] == tc_ref[...]                               # (tm, tn) bool

    pos = jnp.where(same, shifted, -_BIG)                           # hardest-positive cands
    neg = jnp.where(same, _BIG, shifted)                            # hardest-negative cands

    # Fold the (tm, tn) tile into the (tm, acc_w) accumulators with elementwise max/min
    # (pure VALU, 128-lane static slices); the XLU lane reduction is deferred to finalize.
    acc_w = max_ref.shape[1]
    pm, nm = max_ref[...], min_ref[...]
    for c in range(shifted.shape[1] // acc_w):                      # static unroll
        sl = slice(c * acc_w, (c + 1) * acc_w)
        pm = jnp.maximum(pm, pos[:, sl])
        nm = jnp.minimum(nm, neg[:, sl])
    max_ref[...] = pm
    min_ref[...] = nm

    @pl.when(j == pl.num_programs(1) - 1)
    def _finalize():
        sq_row = sqr_ref[...]                                       # (tm, 1), precomputed
        pos_sq = jnp.max(max_ref[...], axis=1, keepdims=True)       # one XLU reduce / row blk
        neg_sq = jnp.min(min_ref[...], axis=1, keepdims=True)
        # Add back the per-row constant, clamp (torch .clamp(min=1e-16)), sqrt only the
        # two (tm, 1) vectors.
        dist_ap = jnp.sqrt(jnp.maximum(sq_row + pos_sq, 1e-16))
        dist_an = jnp.sqrt(jnp.maximum(sq_row + neg_sq, 1e-16))
        # margin_ranking_loss with y = 1: max(0, pos_max - neg_min + margin), per row.
        out_ref[...] = jnp.maximum(dist_ap - dist_an + jnp.float32(margin), 0.0)


def triplet_semihard_loss(inputs, targets, margin=0.0, size_average=True):
    """inputs: (N, D) float features; targets: (N,) int labels. Returns scalar loss."""
    n, d = inputs.shape
    d_pad = max(_round_up(d, 128), 128)
    itemsize = jnp.dtype(inputs.dtype).itemsize
    n_pad, tm, tn = _choose_tiles(n, d_pad, itemsize)
    acc_w = 128 if tn % 128 == 0 else tn

    # Zero-pad features (pads change neither the Gram nor the norms); keep caller dtype.
    x = inputs
    if d_pad != d:
        x = jnp.pad(x, ((0, 0), (0, d_pad - d)))
    if n_pad != n:
        x = jnp.pad(x, ((0, n_pad - n), (0, 0)))
    # Fold the -2 into the row operand stream (exact power-of-two scale, O(N*D) once).
    x_row = x * jnp.asarray(-2.0, dtype=x.dtype)

    # Remap labels to be non-negative so the -1 / -2 padding sentinels cannot collide
    # with legitimate (possibly negative) user labels.
    t = targets.astype(jnp.int32)
    t = t - jnp.min(t)
    t_row = jnp.pad(t, (0, n_pad - n), constant_values=-2).reshape(n_pad, 1)
    t_col = jnp.pad(t, (0, n_pad - n), constant_values=-1).reshape(1, n_pad)

    # Row/column squared norms precomputed once (f32): the kernel never reduces over the
    # feature axis. Padded columns get +BIG so they are never picked as hardest negative.
    sq = jnp.sum(inputs.astype(jnp.float32) ** 2, axis=1)
    sq_row = jnp.pad(sq, (0, n_pad - n)).reshape(n_pad, 1)
    sq_col = jnp.pad(sq, (0, n_pad - n), constant_values=_BIG).reshape(1, n_pad)

    grid = (n_pad // tm, n_pad // tn)

    # Explicit scoped-VMEM limit: above v5e's 16 MiB default for large tiles/feature
    # dims, kept under v7x's 64 MiB physical VMEM.
    budget = _footprint_bytes(tm, tn, d_pad, itemsize)
    vmem_limit = int(min(max(budget + (budget >> 2), 32 * 1024 * 1024),
                         56 * 1024 * 1024))

    per_row = pl.pallas_call(
        functools.partial(_triplet_kernel, margin=float(margin)),
        out_shape=jax.ShapeDtypeStruct((n_pad, 1), jnp.float32),
        grid_spec=pltpu.PrefetchScalarGridSpec(
            num_scalar_prefetch=0,
            grid=grid,
            in_specs=[
                pl.BlockSpec((tm, d_pad), lambda i, j: (i, 0)),   # -2 * row features
                pl.BlockSpec((tn, d_pad), lambda i, j: (j, 0)),   # col features
                pl.BlockSpec((1, tn), lambda i, j: (0, j)),       # col squared norms
                pl.BlockSpec((tm, 1), lambda i, j: (i, 0)),       # row squared norms
                pl.BlockSpec((tm, 1), lambda i, j: (i, 0)),       # row labels
                pl.BlockSpec((1, tn), lambda i, j: (0, j)),       # col labels
            ],
            out_specs=pl.BlockSpec((tm, 1), lambda i, j: (i, 0)),
            scratch_shapes=[pltpu.VMEM((tm, acc_w), jnp.float32),   # hardest-pos acc
                            pltpu.VMEM((tm, acc_w), jnp.float32)],  # hardest-neg acc
        ),
        compiler_params=pltpu.CompilerParams(
            dimension_semantics=("parallel", "arbitrary"),
            vmem_limit_bytes=vmem_limit),
    )(x_row, x, sq_col, sq_row, t_row, t_col)

    per_row = per_row[:n, 0]
    return jnp.mean(per_row) if size_average else jnp.sum(per_row)


def _reference_triplet_semihard_loss(inputs, targets, margin=0.0, size_average=True):
    """Pure-JAX mirror of the PyTorch forward (+/-1e6 mask offsets, clamp 1e-16)."""
    x = inputs.astype(jnp.float32)
    same = (targets[:, None] == targets[None, :]).astype(jnp.float32)
    sq = jnp.sum(x * x, axis=1, keepdims=True)
    gram = jnp.matmul(x, x.T, precision=jax.lax.Precision.HIGHEST)
    dist2 = sq + sq.T - 2.0 * gram
    dist = jnp.sqrt(jnp.clip(dist2, 1e-16, None))
    pos_max = jnp.max(dist - 1e6 * (1.0 - same), axis=1)
    neg_min = jnp.min(dist + 1e6 * same, axis=1)
    per = jnp.maximum(pos_max - neg_min + margin, 0.0)
    return jnp.mean(per) if size_average else jnp.sum(per)


if __name__ == "__main__":
    key = jax.random.PRNGKey(0)
    k_feat, k_big_feat, k_big_lab = jax.random.split(key, 3)

    # Small deterministic case consistent with the module: batch=8, channels=32,
    # 4 classes x 2 samples (every row has a positive and a negative).
    n, d = 8, 32
    inputs = jax.random.normal(k_feat, (n, d), dtype=jnp.float32)
    targets = jnp.array([0, 0, 1, 1, 2, 2, 3, 3], dtype=jnp.int32)

    loss = jax.block_until_ready(triplet_semihard_loss(inputs, targets, margin=0.3))
    ref = jax.block_until_ready(
        _reference_triplet_semihard_loss(inputs, targets, margin=0.3))
    assert jnp.allclose(loss, ref, rtol=1e-4, atol=1e-4), (loss, ref)

    # Default-margin configuration of the module.
    loss0 = jax.block_until_ready(triplet_semihard_loss(inputs, targets, margin=0.0))
    ref0 = jax.block_until_ready(
        _reference_triplet_semihard_loss(inputs, targets, margin=0.0))
    assert jnp.allclose(loss0, ref0, rtol=1e-4, atol=1e-4), (loss0, ref0)

    # Exercise the multi-block tiled path (several row & column blocks, padding and
    # sentinel labels) at a still-modest size.
    n2, d2 = 600, 72
    inputs2 = jax.random.normal(k_big_feat, (n2, d2), dtype=jnp.float32)
    targets2 = jax.random.randint(k_big_lab, (n2,), 0, 10, dtype=jnp.int32)
    loss2 = jax.block_until_ready(
        triplet_semihard_loss(inputs2, targets2, margin=0.2))
    ref2 = jax.block_until_ready(
        _reference_triplet_semihard_loss(inputs2, targets2, margin=0.2))
    assert jnp.allclose(loss2, ref2, rtol=1e-4, atol=1e-4), (loss2, ref2)

    print("KERNEL_OK")
</pallas_src>

<mosaic_0001>
module attributes {stable_mosaic.version = 11 : i64} {
  func.func @_triplet_kernel(%arg0: i32, %arg1: i32, %arg2: memref<8x128xf32, #tpu.memory_space<vmem>>, %arg3: memref<8x128xf32, #tpu.memory_space<vmem>>, %arg4: memref<1x8xf32, #tpu.memory_space<vmem>>, %arg5: memref<8x1xf32, #tpu.memory_space<vmem>>, %arg6: memref<8x1xi32, #tpu.memory_space<vmem>>, %arg7: memref<1x8xi32, #tpu.memory_space<vmem>>, %arg8: memref<8x1xf32, #tpu.memory_space<vmem>>, %arg9: memref<8x8xf32, #tpu.memory_space<vmem>>, %arg10: memref<8x8xf32, #tpu.memory_space<vmem>>) attributes {dimension_semantics = [#tpu.dimension_semantics<parallel>, #tpu.dimension_semantics<arbitrary>], iteration_bounds = array<i64: 1, 1>, scalar_prefetch = 0 : i64, scratch_operands = 2 : i64, tpu.core_type = #tpu.core_type<tc>, window_params = [{transform_indices = @transform_0, window_bounds = array<i64: 8, 128>}, {transform_indices = @transform_1, window_bounds = array<i64: 8, 128>}, {transform_indices = @transform_2, window_bounds = array<i64: 1, 8>}, {transform_indices = @transform_3, window_bounds = array<i64: 8, 1>}, {transform_indices = @transform_4, window_bounds = array<i64: 8, 1>}, {transform_indices = @transform_5, window_bounds = array<i64: 1, 8>}, {transform_indices = @transform_6, window_bounds = array<i64: 8, 1>}]} {
    %c0_i32 = arith.constant 0 : i32
    %0 = arith.cmpi eq, %arg1, %c0_i32 : i32
    %1 = arith.extui %0 : i1 to i32
    %c0_i32_0 = arith.constant 0 : i32
    %2 = arith.cmpi ne, %1, %c0_i32_0 : i32
    scf.if %2 {
      %cst_22 = arith.constant -1.000000e+30 : f32
      %27 = vector.broadcast %cst_22 : f32 to vector<8x8xf32>
      %c0_23 = arith.constant 0 : index
      %c0_24 = arith.constant 0 : index
      %28 = vector.load %arg9[%c0_23, %c0_24] : memref<8x8xf32, #tpu.memory_space<vmem>>, vector<8x8xf32>
      tpu.vector_store %arg9[%c0_23, %c0_24], %27 {strides = array<i32>} : memref<8x8xf32, #tpu.memory_space<vmem>>, vector<8x8xf32>,
      %cst_25 = arith.constant 1.000000e+30 : f32
      %29 = vector.broadcast %cst_25 : f32 to vector<8x8xf32>
      %c0_26 = arith.constant 0 : index
      %c0_27 = arith.constant 0 : index
      %30 = vector.load %arg10[%c0_26, %c0_27] : memref<8x8xf32, #tpu.memory_space<vmem>>, vector<8x8xf32>
      tpu.vector_store %arg10[%c0_26, %c0_27], %29 {strides = array<i32>} : memref<8x8xf32, #tpu.memory_space<vmem>>, vector<8x8xf32>,
    } else {
    }
    %c0 = arith.constant 0 : index
    %c0_1 = arith.constant 0 : index
    %3 = vector.load %arg2[%c0, %c0_1] : memref<8x128xf32, #tpu.memory_space<vmem>>, vector<8x128xf32>
    %c0_2 = arith.constant 0 : index
    %c0_3 = arith.constant 0 : index
    %4 = vector.load %arg3[%c0_2, %c0_3] : memref<8x128xf32, #tpu.memory_space<vmem>>, vector<8x128xf32>
    %cst = arith.constant dense<0.000000e+00> : vector<8x8xf32>
    %5 = tpu.matmul %3, %4, %cst {dimension_numbers = #tpu.dot_dimension_numbers<[1], [1], [0], [0], [0, 0, 1, 0], [], []>} : vector<8x128xf32>, vector<8x128xf32>, vector<8x8xf32> -> vector<8x8xf32>
    %c0_4 = arith.constant 0 : index
    %c0_5 = arith.constant 0 : index
    %6 = vector.load %arg4[%c0_4, %c0_5] : memref<1x8xf32, #tpu.memory_space<vmem>>, vector<1x8xf32>
    %7 = vector.broadcast %6 : vector<1x8xf32> to vector<8x8xf32>
    %8 = arith.addf %7, %5 : vector<8x8xf32>
    %c0_6 = arith.constant 0 : index
    %c0_7 = arith.constant 0 : index
    %9 = vector.load %arg6[%c0_6, %c0_7] : memref<8x1xi32, #tpu.memory_space<vmem>>, vector<8x1xi32>
    %c0_8 = arith.constant 0 : index
    %c0_9 = arith.constant 0 : index
    %10 = vector.load %arg7[%c0_8, %c0_9] : memref<1x8xi32, #tpu.memory_space<vmem>>, vector<1x8xi32>
    %11 = vector.broadcast %9 : vector<8x1xi32> to vector<8x8xi32>
    %12 = vector.broadcast %10 : vector<1x8xi32> to vector<8x8xi32>
    %13 = arith.cmpi eq, %11, %12 : vector<8x8xi32>
    %cst_10 = arith.constant -1.000000e+30 : f32
    %14 = vector.broadcast %cst_10 : f32 to vector<8x8xf32>
    %15 = arith.select %13, %8, %14 : vector<8x8xi1>, vector<8x8xf32>
    %cst_11 = arith.constant 1.000000e+30 : f32
    %16 = vector.broadcast %cst_11 : f32 to vector<8x8xf32>
    %17 = arith.select %13, %16, %8 : vector<8x8xi1>, vector<8x8xf32>
    %c0_12 = arith.constant 0 : index
    %c0_13 = arith.constant 0 : index
    %18 = vector.load %arg9[%c0_12, %c0_13] : memref<8x8xf32, #tpu.memory_space<vmem>>, vector<8x8xf32>
    %c0_14 = arith.constant 0 : index
    %c0_15 = arith.constant 0 : index
    %19 = vector.load %arg10[%c0_14, %c0_15] : memref<8x8xf32, #tpu.memory_space<vmem>>, vector<8x8xf32>
    %20 = arith.maximumf %18, %15 : vector<8x8xf32>
    %21 = arith.minimumf %19, %17 : vector<8x8xf32>
    %c0_16 = arith.constant 0 : index
    %c0_17 = arith.constant 0 : index
    %22 = vector.load %arg9[%c0_16, %c0_17] : memref<8x8xf32, #tpu.memory_space<vmem>>, vector<8x8xf32>
    tpu.vector_store %arg9[%c0_16, %c0_17], %20 {strides = array<i32>} : memref<8x8xf32, #tpu.memory_space<vmem>>, vector<8x8xf32>,
    %c0_18 = arith.constant 0 : index
    %c0_19 = arith.constant 0 : index
    %23 = vector.load %arg10[%c0_18, %c0_19] : memref<8x8xf32, #tpu.memory_space<vmem>>, vector<8x8xf32>
    tpu.vector_store %arg10[%c0_18, %c0_19], %21 {strides = array<i32>} : memref<8x8xf32, #tpu.memory_space<vmem>>, vector<8x8xf32>,
    %c0_i32_20 = arith.constant 0 : i32
    %24 = arith.cmpi eq, %arg1, %c0_i32_20 : i32
    %25 = arith.extui %24 : i1 to i32
    %c0_i32_21 = arith.constant 0 : i32
    %26 = arith.cmpi ne, %25, %c0_i32_21 : i32
    scf.if %26 {
      %c0_22 = arith.constant 0 : index
      %c0_23 = arith.constant 0 : index
      %27 = vector.load %arg5[%c0_22, %c0_23] : memref<8x1xf32, #tpu.memory_space<vmem>>, vector<8x1xf32>
      %c0_24 = arith.constant 0 : index
      %c0_25 = arith.constant 0 : index
      %28 = vector.load %arg9[%c0_24, %c0_25] : memref<8x8xf32, #tpu.memory_space<vmem>>, vector<8x8xf32>
      %cst_26 = arith.constant dense<0xFF800000> : vector<8xf32>
      %29 = vector.multi_reduction <maximumf>, %28, %cst_26 [1] : vector<8x8xf32> to vector<8xf32>
      %30 = vector.shape_cast %29 : vector<8xf32> to vector<8x1xf32>
      %c0_27 = arith.constant 0 : index
      %c0_28 = arith.constant 0 : index
      %31 = vector.load %arg10[%c0_27, %c0_28] : memref<8x8xf32, #tpu.memory_space<vmem>>, vector<8x8xf32>
      %cst_29 = arith.constant dense<0x7F800000> : vector<8xf32>
      %32 = vector.multi_reduction <minimumf>, %31, %cst_29 [1] : vector<8x8xf32> to vector<8xf32>
      %33 = vector.shape_cast %32 : vector<8xf32> to vector<8x1xf32>
      %34 = arith.addf %27, %30 : vector<8x1xf32>
      %cst_30 = arith.constant 1.000000e-16 : f32
      %35 = vector.broadcast %cst_30 : f32 to vector<8x1xf32>
      %36 = arith.maximumf %34, %35 : vector<8x1xf32>
      %37 = math.sqrt %36 : vector<8x1xf32>
      %38 = arith.addf %27, %33 : vector<8x1xf32>
      %cst_31 = arith.constant 1.000000e-16 : f32
      %39 = vector.broadcast %cst_31 : f32 to vector<8x1xf32>
      %40 = arith.maximumf %38, %39 : vector<8x1xf32>
      %41 = math.sqrt %40 : vector<8x1xf32>
      %42 = arith.subf %37, %41 : vector<8x1xf32>
      %cst_32 = arith.constant 3.000000e-01 : f32
      %43 = vector.broadcast %cst_32 : f32 to vector<8x1xf32>
      %44 = arith.addf %42, %43 : vector<8x1xf32>
      %cst_33 = arith.constant 0.000000e+00 : f32
      %45 = vector.broadcast %cst_33 : f32 to vector<8x1xf32>
      %46 = arith.maximumf %44, %45 : vector<8x1xf32>
      %c0_34 = arith.constant 0 : index
      %c0_35 = arith.constant 0 : index
      %47 = vector.load %arg8[%c0_34, %c0_35] : memref<8x1xf32, #tpu.memory_space<vmem>>, vector<8x1xf32>
      tpu.vector_store %arg8[%c0_34, %c0_35], %46 {strides = array<i32>} : memref<8x1xf32, #tpu.memory_space<vmem>>, vector<8x1xf32>,
    } else {
    }
    return
  }
  func.func @transform_0(%arg0: i32, %arg1: i32) -> (i32, i32) {
    %c0_i32 = arith.constant 0 : i32
    %c0_i32_0 = arith.constant 0 : i32
    return %arg0, %c0_i32 : i32, i32
  }
  func.func @transform_1(%arg0: i32, %arg1: i32) -> (i32, i32) {
    %c0_i32 = arith.constant 0 : i32
    %c0_i32_0 = arith.constant 0 : i32
    return %arg1, %c0_i32 : i32, i32
  }
  func.func @transform_2(%arg0: i32, %arg1: i32) -> (i32, i32) {
    %c0_i32 = arith.constant 0 : i32
    %c0_i32_0 = arith.constant 0 : i32
    return %c0_i32, %arg1 : i32, i32
  }
  func.func @transform_3(%arg0: i32, %arg1: i32) -> (i32, i32) {
    %c0_i32 = arith.constant 0 : i32
    %c0_i32_0 = arith.constant 0 : i32
    return %arg0, %c0_i32 : i32, i32
  }
  func.func @transform_4(%arg0: i32, %arg1: i32) -> (i32, i32) {
    %c0_i32 = arith.constant 0 : i32
    %c0_i32_0 = arith.constant 0 : i32
    return %arg0, %c0_i32 : i32, i32
  }
  func.func @transform_5(%arg0: i32, %arg1: i32) -> (i32, i32) {
    %c0_i32 = arith.constant 0 : i32
    %c0_i32_0 = arith.constant 0 : i32
    return %c0_i32, %arg1 : i32, i32
  }
  func.func @transform_6(%arg0: i32, %arg1: i32) -> (i32, i32) {
    %c0_i32 = arith.constant 0 : i32
    %c0_i32_0 = arith.constant 0 : i32
    return %arg0, %c0_i32 : i32, i32
  }
}

</mosaic_0001>

<bundles_post_ra>
// kernel: tpu_custom_call.1
= control target key start
LH: loop header
LB: loop body
LE: loop exit
PB: predicated region body
PF: predicated region fallthrough
CT: control target
= control target key end

     0   :  { %v132_v1 = vmov 0   ;;  %vm27_vm0 = vcmask 64512   ;;  %v133_v4 = vmov -1e+30   ;;  %v134_v5 = vmov 1e+30   ;;  %s197_s1 = inlined_call_operand.vmem [shape: f32[8,128], index: 1, kind: input, shape index: {}]   ;;  %s198_s0 = inlined_call_operand.vmem [shape: f32[8,128], index: 0, kind: input, shape index: {}]   ;;  %s199_s4 = inlined_call_operand.vmem [shape: s32[8,1], index: 4, kind: input, shape index: {}]   ;;  %s200_s2 = inlined_call_operand.vmem [shape: f32[1,8], index: 2, kind: input, shape index: {}]   ;;  %s201_s5 = inlined_call_operand.vmem [shape: s32[1,8], index: 5, kind: input, shape index: {}]   ;;  %s202_s3 = inlined_call_operand.vmem [shape: f32[8,1], index: 3, kind: input, shape index: {}]   ;;  %s203_s6 = inlined_call_operand.vmem [shape: f32[8,1], index: 6, kind: output, shape index: {}]  }
   0x1   :  { %v31_v0 = vld [vmem:[%s197_s1] sm:$0xff]  ;;  %125 = vset.pattern.permute.xlu0 %v132_v1  ;;  %28 = vst.msk [vmem:[#allocation2] sm:$0xff] %vm27_vm0, %v133_v4  ;;  %vm116_vm6 = vcmask 7168  }
   0x2   :  { %v57_v2 = vld [vmem:[%s199_s4] sm:$0xff]  ;;  %47 = vmatpush.xpose.msra.mxu0 %v31_v0  ;;  %29 = vst.msk [vmem:[#allocation3] sm:$0xff] %vm27_vm0, %v134_v5 }
   0x3   :  { %v30_v3 = vld [vmem:[%s198_s0] sm:$0xff]  ;;  %60 = vperm.xlu0 %125, %v57_v2  }
   0x4   :  { %v127_v6 = vld [vmem:[%s201_s5] ss:$0 sm:$0xff] }
   0x5   :  { %48 = vmatmul.f32.vlgmr.msra.gmra.mxu0 %v30_v3  ;;  %v126_v7 = vld [vmem:[%s200_s2] ss:$0 sm:$0xff] }
   0x6   :  { %v76_v21 = vld [vmem:[%s202_s3] sm:$0xff] }
   0x8   :  { %v66_v11 = vld [vmem:[#allocation2] sm:$0xff] }
   0x9   :  { %v67_v12 = vld [vmem:[#allocation3] sm:$0xff] }
  0x75   :  { %v61_v8 = vpop.permute.xlu0 %60 }
  0x76   :  { %vm63_vm1 = vcmp.eq.s32.totalorder %v61_v8, %v127_v6 }
  0x82   :  { %v49_v9 = vpop.f32.mrf.mxu0 }
  0x83   :  { %v56_v10 = vadd.f32 %v126_v7, %v49_v9 }
  0x85   :  { %v64_v13 = vsel %vm63_vm1, %v56_v10, -1e+30  ;;  %v65_v14 = vsel %vm63_vm1, 1e+30, %v56_v10 }
  0x86   :  { %v68_v15 = vmax.f32 %v66_v11, %v64_v13  ;;  %v69_v16 = vmin.f32 %v67_v12, %v65_v14 }
  0x88   :  { %71 = vst.msk [vmem:[#allocation2] sm:$0xff] %vm27_vm0, %v68_v15 }
  0x89   :  { %72 = vst.msk [vmem:[#allocation3] sm:$0xff] %vm27_vm0, %v69_v16 }
  0x8f   :  { %v77_v17 = vld [vmem:[#allocation2] sm:$0xff] }
  0x90   :  { %v81_v18 = vld [vmem:[#allocation3] sm:$0xff]  ;;  %v78_v19 = vsel %vm27_vm0, %v77_v17, -inf }
  0x91   :  { %v82_v20 = vsel %vm27_vm0, %v81_v18, inf  ;;  %79 = vmax.xlane.f32.xlu0 %v78_v19 }
  0x92   :  { %83 = vmin.xlane.f32.xlu1 %v82_v20 }
 0x104   :  { %v80_v22 = vpop.xlane.xlu0 %79 }
 0x105   :  { %v84_v23 = vpop.xlane.xlu1 %83  ;;  %v85_v24 = vadd.f32 %v80_v22, %v76_v21 }
 0x106   :  { %v99_v25 = vadd.f32 %v84_v23, %v76_v21 }
 0x107   :  { %v86_v26 = vmax.f32 %v85_v24, 1e-16 }
 0x108   :  { %v100_v27 = vmax.f32 %v99_v25, 1e-16 }
 0x109   :  { %128 = vrsqrt.f32 %v86_v26  ;;  %vm94_vm2 = vcmp.eq.f32.partialorder %v86_v26, inf  ;;  %v97_v42 = vand.u32 2147483648, %v86_v26  ;;  %vm96_vm4 = vcmp.eq.f32.partialorder %v86_v26, 0.0 }
 0x10a   :  { %130 = vrsqrt.f32 %v100_v27  ;;  %vm108_vm3 = vcmp.eq.f32.partialorder %v100_v27, inf  ;;  %v111_v43 = vand.u32 2147483648, %v100_v27  ;;  %vm110_vm5 = vcmp.eq.f32.partialorder %v100_v27, 0.0 }
 0x10f   :  { %v129_v28 = vpop.eup %128 }
 0x110   :  { %v131_v29 = vpop.eup %130  ;;  %v88_v30 = vmul.f32 %v129_v28, %v86_v26 }
 0x111   :  { %v102_v31 = vmul.f32 %v131_v29, %v100_v27 }
 0x112   :  { %v89_v32 = vmul.f32 %v129_v28, %v88_v30 }
 0x113   :  { %v103_v33 = vmul.f32 %v131_v29, %v102_v31 }
 0x114   :  { %v90_v34 = vmul.f32 0.5, %v89_v32 }
 0x115   :  { %v104_v35 = vmul.f32 0.5, %v103_v33 }
 0x116   :  { %v91_v36 = vsub.f32 1.5, %v90_v34 }
 0x117   :  { %v105_v37 = vsub.f32 1.5, %v104_v35 }
 0x118   :  { %v92_v38 = vmul.f32 %v129_v28, %v91_v36 }
 0x119   :  { %v106_v39 = vmul.f32 %v131_v29, %v105_v37 }
 0x11a   :  { %v93_v40 = vmul.f32 %v92_v38, %v86_v26 }
 0x11b   :  { %v107_v41 = vmul.f32 %v106_v39, %v100_v27 }
 0x11c   :  { %v95_v44 = vsel %vm94_vm2, %v86_v26, %v93_v40 }
 0x11d   :  { %v109_v45 = vsel %vm108_vm3, %v100_v27, %v107_v41  ;;  %v98_v46 = vsel %vm96_vm4, %v97_v42, %v95_v44 }
 0x11e   :  { %v112_v47 = vsel %vm110_vm5, %v111_v43, %v109_v45 }
 0x11f   :  { %v113_v48 = vsub.f32 %v98_v46, %v112_v47 }
 0x121   :  { %v114_v49 = vadd.f32 0.3, %v113_v48 }
 0x123   :  { %v115_v50 = vmax.f32 %v114_v49, 0.0 }
 0x125   :  { %117 = vst.msk [vmem:[%s203_s6] sm:$0xff] %vm116_vm6, %v115_v50 }

</bundles_post_ra>
